<compile_context>
chip_gen: v6e
topology: v6e:2x2x1
jax: 0.10.0
libtpu: 0.0.40
codegen_flags: <defaults>
</compile_context>

<pallas_src>
import functools

import jax
import jax.numpy as jnp
from jax.experimental import pallas as pl
from jax.experimental.pallas import tpu as pltpu

_MiB = 2 ** 20


def _round_up(a, b):
    return ((a + b - 1) // b) * b


# ---------------------------------------------------------------------------
# Chip-generation-aware defaults (tm_max, ti, VMEM budget, #parallel cores).
# ---------------------------------------------------------------------------
def _chip_defaults():
    kind = ""
    try:
        kind = jax.devices()[0].device_kind.lower()
    except Exception:
        pass
    phys_vmem = None
    try:
        phys_vmem = int(pltpu.get_tpu_info().vmem_capacity_bytes)
    except Exception:
        pass

    if ("v7" in kind) or ("7x" in kind) or (phys_vmem is not None and phys_vmem <= 64 * _MiB):
        # v7x: 64 MiB VMEM/TC, 2 TCs/chip, ~3.2 TB/s HBM -> roofline knee ~ tm=310.
        cfg = dict(tm_max=384, ti=512, vmem_cap=56 * _MiB, parallel_cores=2)
    elif "v6" in kind:
        # v6e: 128 MiB VMEM, knee ~ tm=650-700 -> large token tiles for prefill.
        cfg = dict(tm_max=768, ti=1024, vmem_cap=100 * _MiB, parallel_cores=1)
    elif ("v5e" in kind) or ("v5 lite" in kind) or ("v5lite" in kind):
        # v5e: knee ~ tm=240 -> tm=256 is already compute-bound; bigger ti means
        # fewer k steps (fewer accumulator sweeps / less per-step overhead).
        cfg = dict(tm_max=256, ti=2048, vmem_cap=100 * _MiB, parallel_cores=1)
    else:
        # Unknown generation: conservative middle ground.
        cfg = dict(tm_max=512, ti=1024, vmem_cap=96 * _MiB, parallel_cores=1)

    if phys_vmem is not None:
        hard = max(16 * _MiB, phys_vmem - 8 * _MiB)   # always leave compiler headroom
        cfg["vmem_cap"] = min(cfg["vmem_cap"], hard)
        cfg["hard_cap"] = hard
    else:
        cfg["hard_cap"] = cfg["vmem_cap"]
    return cfg


def _choose_tm(T, *, tm_max, min_tiles=1):
    """Token tile: as large as allowed, rounded down so the last tile is not mostly
    padding, and split further so every TensorCore (v7x megacore) gets >=1 tile."""
    T = max(int(T), 1)
    granule = 128 if T >= 128 else 16
    hi = max(granule, _round_up(min(tm_max, _round_up(T, granule)), granule))
    n_tiles = pl.cdiv(T, hi)
    n_tiles = max(n_tiles, min(min_tiles, pl.cdiv(T, granule)))
    tm = _round_up(pl.cdiv(T, n_tiles), granule)
    return min(tm, hi)


def _vmem_bytes(tm, ti, H, itemsize, n_chunks):
    """Rough per-step VMEM footprint: double-buffered tiles + f32 accumulator + live
    per-chunk intermediates."""
    cs = ti // n_chunks
    dbl = 2  # default double-buffered pipeline copies
    pipelined = dbl * itemsize * (tm * H + H * 2 * ti + ti * H + tm * H)
    acc = tm * H * 4
    interm = tm * cs * (4 + 4 + itemsize)  # gate f32 + up f32 + h cast, one chunk live
    return pipelined + acc + interm


# ---------------------------------------------------------------------------
# Kernel body: one (token-tile i, I-tile k) step.
# ---------------------------------------------------------------------------
def _stablelm_mlp_kernel(x_ref, wgu_ref, wd_ref, o_ref, acc_ref, *, ti, n_chunks):
    k = pl.program_id(1)

    @pl.when(k == 0)
    def _init():
        acc_ref[...] = jnp.zeros_like(acc_ref)

    x = x_ref[...]                                            # (tm, H)
    cs = ti // n_chunks
    # Static unroll over ti/n_chunks chunks: halves the live f32 intermediates and
    # lets one chunk's EUP sigmoid overlap the other chunk's MXU down-projection.
    for c in range(n_chunks):
        lo = c * cs
        gate = jnp.dot(x, wgu_ref[:, pl.ds(lo, cs)],
                       preferred_element_type=jnp.float32)     # (tm, cs) f32
        up = jnp.dot(x, wgu_ref[:, pl.ds(ti + lo, cs)],
                     preferred_element_type=jnp.float32)       # (tm, cs) f32
        h = (gate * jax.nn.sigmoid(gate)) * up                 # SiluAndMul in f32
        acc_ref[...] += jnp.dot(h.astype(wd_ref.dtype), wd_ref[pl.ds(lo, cs), :],
                                preferred_element_type=jnp.float32)  # (tm, H)

    @pl.when(k == pl.num_programs(1) - 1)
    def _finalize():
        o_ref[...] = acc_ref[...].astype(o_ref.dtype)


# ---------------------------------------------------------------------------
# Module: weight prep happens once; __call__ is the hot path.
# ---------------------------------------------------------------------------
class StablelmMLP:
    """Pallas-TPU StablelmMLP: out = (silu(x @ W_gate) * (x @ W_up)) @ W_down."""

    def __init__(self, w_gate, w_up, w_down, *, ti=None, tm_max=None,
                 vmem_limit_bytes=None):
        H, I = w_gate.shape
        assert w_up.shape == (H, I), w_up.shape
        assert w_down.shape == (I, H), w_down.shape
        cfg = _chip_defaults()

        self.H, self.I = H, I
        self.tm_max = int(tm_max) if tm_max is not None else cfg["tm_max"]
        self.min_tiles = cfg["parallel_cores"]          # keep both v7x TCs busy
        self.vmem_soft_cap = (int(vmem_limit_bytes) if vmem_limit_bytes is not None
                              else cfg["vmem_cap"])
        self.vmem_hard_cap = (int(vmem_limit_bytes) if vmem_limit_bytes is not None
                              else cfg["hard_cap"])

        ti = int(ti) if ti is not None else cfg["ti"]
        ti = max(128, min(_round_up(ti, 128), _round_up(I, 128)))
        self.ti = ti
        self.n_chunks = 2 if ti % 256 == 0 else 1       # chunk slices stay 128-lane aligned

        # --- one-time weight prep (hoisted out of the per-call hot path) -------
        Ip = _round_up(I, ti)
        if Ip != I:
            pad = Ip - I
            w_gate = jnp.pad(w_gate, ((0, 0), (0, pad)))
            w_up = jnp.pad(w_up, ((0, 0), (0, pad)))
            w_down = jnp.pad(w_down, ((0, pad), (0, 0)))
        self.Ip = Ip
        n_i = Ip // ti
        # Interleave gate/up per I-block so a single BlockSpec streams [gate_k | up_k].
        self.w_gu = jnp.concatenate(
            [w_gate.reshape(H, n_i, ti), w_up.reshape(H, n_i, ti)], axis=2
        ).reshape(H, 2 * Ip)
        self.w_down = w_down

    def __call__(self, x):
        H, ti, Ip = self.H, self.ti, self.Ip
        orig_shape = x.shape
        assert orig_shape[-1] == H
        x2 = x.reshape(-1, H)
        T = x2.shape[0]
        itemsize = jnp.dtype(x2.dtype).itemsize

        tm = _choose_tm(T, tm_max=self.tm_max, min_tiles=self.min_tiles)
        # Shrink tm if the pipelined tile footprint would blow the VMEM budget.
        while tm > 128 and _vmem_bytes(tm, ti, H, itemsize, self.n_chunks) * 1.25 > self.vmem_soft_cap:
            tm -= 128

        Tp = _round_up(T, tm)
        if Tp != T:
            x2 = jnp.pad(x2, ((0, Tp - T), (0, 0)))
        n_token_tiles = Tp // tm

        est = _vmem_bytes(tm, ti, H, itemsize, self.n_chunks)
        vmem_limit = int(min(self.vmem_hard_cap, max(est * 1.25, 32 * _MiB)))

        cost = pl.CostEstimate(
            flops=2 * Tp * H * (2 * Ip) + 2 * Tp * Ip * H,
            transcendentals=Tp * Ip,
            # Weights re-stream from HBM once per token tile.
            bytes_accessed=itemsize * (Tp * H + n_token_tiles * (2 * H * Ip + Ip * H) + Tp * H),
        )

        kernel = functools.partial(_stablelm_mlp_kernel, ti=ti, n_chunks=self.n_chunks)
        out = pl.pallas_call(
            kernel,
            out_shape=jax.ShapeDtypeStruct((Tp, H), x2.dtype),
            grid_spec=pltpu.PrefetchScalarGridSpec(
                num_scalar_prefetch=0,
                grid=(n_token_tiles, Ip // ti),            # (parallel tokens, arbitrary I reduction)
                in_specs=[
                    pl.BlockSpec((tm, H), lambda i, k: (i, 0)),      # x tile, reused over k
                    pl.BlockSpec((H, 2 * ti), lambda i, k: (0, k)),  # [gate_k | up_k] slab
                    pl.BlockSpec((ti, H), lambda i, k: (k, 0)),      # W_down slab
                ],
                out_specs=pl.BlockSpec((tm, H), lambda i, k: (i, 0)),  # constant over k => resident
                scratch_shapes=[pltpu.VMEM((tm, H), jnp.float32)],
            ),
            compiler_params=pltpu.CompilerParams(
                dimension_semantics=("parallel", "arbitrary"),
                vmem_limit_bytes=vmem_limit,
            ),
            cost_estimate=cost,
        )(x2, self.w_gu, self.w_down)
        return out[:T].reshape(orig_shape)


def stablelm_mlp_reference(x, w_gate, w_up, w_down):
    """Same precision strategy as the kernel: input-dtype matmuls, f32 accumulation."""
    x2 = x.reshape(-1, x.shape[-1])
    gate = jnp.dot(x2, w_gate, preferred_element_type=jnp.float32)
    up = jnp.dot(x2, w_up, preferred_element_type=jnp.float32)
    h = (gate * jax.nn.sigmoid(gate)) * up
    out = jnp.dot(h.astype(w_down.dtype), w_down, preferred_element_type=jnp.float32)
    return out.astype(x.dtype).reshape(x.shape)


if __name__ == "__main__":
    # Small shapes consistent with the module: batch=2, seq=10, hidden=128,
    # intermediate=512, bf16 weights/activations with f32 accumulation.
    batch, seq = 2, 10
    hidden_size = 128
    intermediate_size = 512
    dtype = jnp.bfloat16

    key = jax.random.PRNGKey(0)
    kx, kg, ku, kd = jax.random.split(key, 4)
    x = jax.random.normal(kx, (batch, seq, hidden_size), jnp.float32)
    w_gate = jax.random.normal(kg, (hidden_size, intermediate_size), jnp.float32) * hidden_size ** -0.5
    w_up = jax.random.normal(ku, (hidden_size, intermediate_size), jnp.float32) * hidden_size ** -0.5
    w_down = jax.random.normal(kd, (intermediate_size, hidden_size), jnp.float32) * intermediate_size ** -0.5
    x, w_gate, w_up, w_down = (a.astype(dtype) for a in (x, w_gate, w_up, w_down))

    ref = stablelm_mlp_reference(x, w_gate, w_up, w_down)

    # 1) Auto-configured (generation-aware tiles). ti resolves to 512 here, so the
    #    chunked (n_chunks=2) kernel body path is exercised.
    mlp = StablelmMLP(w_gate, w_up, w_down)
    out = jax.block_until_ready(mlp(x))
    assert out.shape == x.shape
    assert jnp.allclose(out.astype(jnp.float32), ref.astype(jnp.float32),
                        atol=3e-2, rtol=3e-2), "auto-config mismatch vs reference"

    # 2) Tiny forced tiles: exercises token padding (20 -> 32), two parallel token
    #    tiles, I padding (512 -> 768) and the 2-step resident f32-accumulator
    #    reduction over the intermediate dimension.
    mlp_small = StablelmMLP(w_gate, w_up, w_down, ti=384, tm_max=16)
    out_small = jax.block_until_ready(mlp_small(x))
    assert jnp.allclose(out_small.astype(jnp.float32), ref.astype(jnp.float32),
                        atol=3e-2, rtol=3e-2), "small-tile mismatch vs reference"

    print("KERNEL_OK")
</pallas_src>

<mosaic_0001>
module attributes {stable_mosaic.version = 11 : i64} {
  func.func @_stablelm_mlp_kernel(%arg0: i32, %arg1: i32, %arg2: memref<32x128xbf16, #tpu.memory_space<vmem>>, %arg3: memref<128x1024xbf16, #tpu.memory_space<vmem>>, %arg4: memref<512x128xbf16, #tpu.memory_space<vmem>>, %arg5: memref<32x128xbf16, #tpu.memory_space<vmem>>, %arg6: memref<32x128xf32, #tpu.memory_space<vmem>>) attributes {dimension_semantics = [#tpu.dimension_semantics<parallel>, #tpu.dimension_semantics<arbitrary>], iteration_bounds = array<i64: 1, 1>, scalar_prefetch = 0 : i64, scratch_operands = 1 : i64, tpu.core_type = #tpu.core_type<tc>, window_params = [{transform_indices = @transform_0, window_bounds = array<i64: 32, 128>}, {transform_indices = @transform_1, window_bounds = array<i64: 128, 1024>}, {transform_indices = @transform_2, window_bounds = array<i64: 512, 128>}, {transform_indices = @transform_3, window_bounds = array<i64: 32, 128>}]} {
    %c0_i32 = arith.constant 0 : i32
    %0 = arith.cmpi eq, %arg1, %c0_i32 : i32
    %1 = arith.extui %0 : i1 to i32
    %c0_i32_0 = arith.constant 0 : i32
    %2 = arith.cmpi ne, %1, %c0_i32_0 : i32
    scf.if %2 {
      %cst_28 = arith.constant 0.000000e+00 : f32
      %41 = vector.broadcast %cst_28 : f32 to vector<32x128xf32>
      %c0_29 = arith.constant 0 : index
      %c0_30 = arith.constant 0 : index
      %42 = vector.load %arg6[%c0_29, %c0_30] : memref<32x128xf32, #tpu.memory_space<vmem>>, vector<32x128xf32>
      tpu.vector_store %arg6[%c0_29, %c0_30], %41 {strides = array<i32>} : memref<32x128xf32, #tpu.memory_space<vmem>>, vector<32x128xf32>,
    } else {
    }
    %c0 = arith.constant 0 : index
    %c0_1 = arith.constant 0 : index
    %3 = vector.load %arg2[%c0, %c0_1] : memref<32x128xbf16, #tpu.memory_space<vmem>>, vector<32x128xbf16>
    %c0_2 = arith.constant 0 : index
    %c0_3 = arith.constant 0 : index
    %4 = vector.load %arg3[%c0_2, %c0_3] : memref<128x1024xbf16, #tpu.memory_space<vmem>>, vector<128x256xbf16>
    %cst = arith.constant dense<0.000000e+00> : vector<32x256xf32>
    %5 = tpu.matmul %3, %4, %cst {dimension_numbers = #tpu.dot_dimension_numbers<[1], [0], [0], [1], [0, 0, 1, 1], [], []>} : vector<32x128xbf16>, vector<128x256xbf16>, vector<32x256xf32> -> vector<32x256xf32>
    %c0_4 = arith.constant 0 : index
    %c512 = arith.constant 512 : index
    %6 = vector.load %arg3[%c0_4, %c512] : memref<128x1024xbf16, #tpu.memory_space<vmem>>, vector<128x256xbf16>
    %cst_5 = arith.constant dense<0.000000e+00> : vector<32x256xf32>
    %7 = tpu.matmul %3, %6, %cst_5 {dimension_numbers = #tpu.dot_dimension_numbers<[1], [0], [0], [1], [0, 0, 1, 1], [], []>} : vector<32x128xbf16>, vector<128x256xbf16>, vector<32x256xf32> -> vector<32x256xf32>
    %8 = arith.negf %5 : vector<32x256xf32>
    %9 = math.exp %8 : vector<32x256xf32>
    %cst_6 = arith.constant 1.000000e+00 : f32
    %10 = vector.broadcast %cst_6 : f32 to vector<32x256xf32>
    %11 = arith.addf %10, %9 : vector<32x256xf32>
    %12 = arith.divf %10, %11 : vector<32x256xf32>
    %13 = arith.mulf %5, %12 : vector<32x256xf32>
    %14 = arith.mulf %13, %7 : vector<32x256xf32>
    %c0_7 = arith.constant 0 : index
    %c0_8 = arith.constant 0 : index
    %15 = vector.load %arg6[%c0_7, %c0_8] : memref<32x128xf32, #tpu.memory_space<vmem>>, vector<32x128xf32>
    %16 = arith.truncf %14 : vector<32x256xf32> to vector<32x256xbf16>
    %c0_9 = arith.constant 0 : index
    %c0_10 = arith.constant 0 : index
    %17 = vector.load %arg4[%c0_9, %c0_10] : memref<512x128xbf16, #tpu.memory_space<vmem>>, vector<256x128xbf16>
    %cst_11 = arith.constant dense<0.000000e+00> : vector<32x128xf32>
    %18 = tpu.matmul %16, %17, %cst_11 {dimension_numbers = #tpu.dot_dimension_numbers<[1], [0], [0], [1], [0, 0, 1, 1], [], []>} : vector<32x256xbf16>, vector<256x128xbf16>, vector<32x128xf32> -> vector<32x128xf32>
    %19 = arith.addf %15, %18 : vector<32x128xf32>
    %c0_12 = arith.constant 0 : index
    %c0_13 = arith.constant 0 : index
    %20 = vector.load %arg6[%c0_12, %c0_13] : memref<32x128xf32, #tpu.memory_space<vmem>>, vector<32x128xf32>
    tpu.vector_store %arg6[%c0_12, %c0_13], %19 {strides = array<i32>} : memref<32x128xf32, #tpu.memory_space<vmem>>, vector<32x128xf32>,
    %c0_14 = arith.constant 0 : index
    %c256 = arith.constant 256 : index
    %21 = vector.load %arg3[%c0_14, %c256] : memref<128x1024xbf16, #tpu.memory_space<vmem>>, vector<128x256xbf16>
    %cst_15 = arith.constant dense<0.000000e+00> : vector<32x256xf32>
    %22 = tpu.matmul %3, %21, %cst_15 {dimension_numbers = #tpu.dot_dimension_numbers<[1], [0], [0], [1], [0, 0, 1, 1], [], []>} : vector<32x128xbf16>, vector<128x256xbf16>, vector<32x256xf32> -> vector<32x256xf32>
    %c0_16 = arith.constant 0 : index
    %c768 = arith.constant 768 : index
    %23 = vector.load %arg3[%c0_16, %c768] : memref<128x1024xbf16, #tpu.memory_space<vmem>>, vector<128x256xbf16>
    %cst_17 = arith.constant dense<0.000000e+00> : vector<32x256xf32>
    %24 = tpu.matmul %3, %23, %cst_17 {dimension_numbers = #tpu.dot_dimension_numbers<[1], [0], [0], [1], [0, 0, 1, 1], [], []>} : vector<32x128xbf16>, vector<128x256xbf16>, vector<32x256xf32> -> vector<32x256xf32>
    %25 = arith.negf %22 : vector<32x256xf32>
    %26 = math.exp %25 : vector<32x256xf32>
    %cst_18 = arith.constant 1.000000e+00 : f32
    %27 = vector.broadcast %cst_18 : f32 to vector<32x256xf32>
    %28 = arith.addf %27, %26 : vector<32x256xf32>
    %29 = arith.divf %27, %28 : vector<32x256xf32>
    %30 = arith.mulf %22, %29 : vector<32x256xf32>
    %31 = arith.mulf %30, %24 : vector<32x256xf32>
    %c0_19 = arith.constant 0 : index
    %c0_20 = arith.constant 0 : index
    %32 = vector.load %arg6[%c0_19, %c0_20] : memref<32x128xf32, #tpu.memory_space<vmem>>, vector<32x128xf32>
    %33 = arith.truncf %31 : vector<32x256xf32> to vector<32x256xbf16>
    %c256_21 = arith.constant 256 : index
    %c0_22 = arith.constant 0 : index
    %34 = vector.load %arg4[%c256_21, %c0_22] : memref<512x128xbf16, #tpu.memory_space<vmem>>, vector<256x128xbf16>
    %cst_23 = arith.constant dense<0.000000e+00> : vector<32x128xf32>
    %35 = tpu.matmul %33, %34, %cst_23 {dimension_numbers = #tpu.dot_dimension_numbers<[1], [0], [0], [1], [0, 0, 1, 1], [], []>} : vector<32x256xbf16>, vector<256x128xbf16>, vector<32x128xf32> -> vector<32x128xf32>
    %36 = arith.addf %32, %35 : vector<32x128xf32>
    %c0_24 = arith.constant 0 : index
    %c0_25 = arith.constant 0 : index
    %37 = vector.load %arg6[%c0_24, %c0_25] : memref<32x128xf32, #tpu.memory_space<vmem>>, vector<32x128xf32>
    tpu.vector_store %arg6[%c0_24, %c0_25], %36 {strides = array<i32>} : memref<32x128xf32, #tpu.memory_space<vmem>>, vector<32x128xf32>,
    %c0_i32_26 = arith.constant 0 : i32
    %38 = arith.cmpi eq, %arg1, %c0_i32_26 : i32
    %39 = arith.extui %38 : i1 to i32
    %c0_i32_27 = arith.constant 0 : i32
    %40 = arith.cmpi ne, %39, %c0_i32_27 : i32
    scf.if %40 {
      %c0_28 = arith.constant 0 : index
      %c0_29 = arith.constant 0 : index
      %41 = vector.load %arg6[%c0_28, %c0_29] : memref<32x128xf32, #tpu.memory_space<vmem>>, vector<32x128xf32>
      %42 = arith.truncf %41 : vector<32x128xf32> to vector<32x128xbf16>
      %c0_30 = arith.constant 0 : index
      %c0_31 = arith.constant 0 : index
      %43 = vector.load %arg5[%c0_30, %c0_31] : memref<32x128xbf16, #tpu.memory_space<vmem>>, vector<32x128xbf16>
      tpu.vector_store %arg5[%c0_30, %c0_31], %42 {strides = array<i32>} : memref<32x128xbf16, #tpu.memory_space<vmem>>, vector<32x128xbf16>,
    } else {
    }
    return
  }
  func.func @transform_0(%arg0: i32, %arg1: i32) -> (i32, i32) {
    %c0_i32 = arith.constant 0 : i32
    %c0_i32_0 = arith.constant 0 : i32
    return %arg0, %c0_i32 : i32, i32
  }
  func.func @transform_1(%arg0: i32, %arg1: i32) -> (i32, i32) {
    %c0_i32 = arith.constant 0 : i32
    %c0_i32_0 = arith.constant 0 : i32
    return %c0_i32, %arg1 : i32, i32
  }
  func.func @transform_2(%arg0: i32, %arg1: i32) -> (i32, i32) {
    %c0_i32 = arith.constant 0 : i32
    %c0_i32_0 = arith.constant 0 : i32
    return %arg1, %c0_i32 : i32, i32
  }
  func.func @transform_3(%arg0: i32, %arg1: i32) -> (i32, i32) {
    %c0_i32 = arith.constant 0 : i32
    %c0_i32_0 = arith.constant 0 : i32
    return %arg0, %c0_i32 : i32, i32
  }
}

</mosaic_0001>

<bundles_post_ra>
// kernel: tpu_custom_call.1
= control target key start
LH: loop header
LB: loop body
LE: loop exit
PB: predicated region body
PF: predicated region fallthrough
CT: control target
= control target key end

     0   :  { %8 = vsyncpa [#allocation4], 0  ;;  %s1751_s0 = inlined_call_operand.hbm [shape: bf16[32,128], index: 0, kind: input, shape index: {}]   ;;  %s1752_s1 = inlined_call_operand.hbm [shape: bf16[128,1024], index: 1, kind: input, shape index: {}]   ;;  %s1753_s2 = inlined_call_operand.hbm [shape: bf16[512,128], index: 2, kind: input, shape index: {}]   ;;  %s1754_s3 = inlined_call_operand.hbm [shape: bf16[32,128], index: 3, kind: output, shape index: {}]  }
   0x1   :  { %9 = vsyncpa [#allocation7], 0 }
   0x2   :  { %10 = vsyncpa [#allocation5], 0  ;;  %s1618_s12 = smov [#allocation6]  }
   0x3   :  { %s28_s13 = sshll.u32 %s1618_s12, 4  ;;  %s29_s13 = int_to_ptr.vmem [resolvable:$true] %s28_s13 }
   0x4   :  { %s1540_s14 = scalar_lea.vmem %s29_s13, 8192  ;;  %p1545_p1 = scmp.lt.s32.totalorder %s29_s13, %s29_s13 }
   0x5   :  { %p1541_p0 = scmp.ne.s32.totalorder %s29_s13, %s1540_s14  ;;  %p1546_p2 = scmp.lt.s32.totalorder %s1540_s14, %s1540_s14 }
   0x7   :  { %p1547_p3 = por %p1546_p2, %p1545_p1 }
   0x9   :  { %p1548_p4 = pnand %p1547_p3, %p1541_p0 }
   0xb   :  { %1551 = shalt.err (!%p1548_p4)
}
   0xc   :  { %s1619_s15 = smov 512   ;;  %s1620_s16 = smov 32  }
   0xd   :  { %34 = dma.hbm_to_vmem [thread:$0]  %s1752_s1, 8192, %s29_s13, [#allocation7], %s1619_s15, %s1619_s15, %s1620_s16  }
   0xe   :  { %s1621_s19 = smov [#allocation3]  }
   0xf   :  { %s16_s20 = sshll.u32 %s1621_s19, 4  ;;  %s17_s20 = int_to_ptr.vmem [resolvable:$true] %s16_s20 }
  0x10   :  { %s1560_s21 = scalar_lea.vmem %s17_s20, 256  ;;  %p1565_p6 = scmp.lt.s32.totalorder %s17_s20, %s17_s20 }
  0x11   :  { %p1561_p5 = scmp.ne.s32.totalorder %s17_s20, %s1560_s21  ;;  %p1566_p7 = scmp.lt.s32.totalorder %s1560_s21, %s1560_s21 }
  0x13   :  { %p1567_p8 = por %p1566_p7, %p1565_p6 }
  0x15   :  { %p1568_p9 = pnand %p1567_p8, %p1561_p5 }
  0x17   :  { %1571 = shalt.err (!%p1568_p9)
}
  0x18   :  { %s1622_s22 = smov 64   ;;  %s1623_s23 = smov 4  }
  0x19   :  { %22 = dma.hbm_to_vmem [thread:$0]  %s1751_s0, 256, %s17_s20, [#allocation4], %s1622_s22, %s1622_s22, %s1623_s23  }
  0x1a   :  { %s1624_s1 = smov [#allocation8]  }
  0x1b   :  { %s40_s26 = sshll.u32 %s1624_s1, 4  ;;  %s41_s26 = int_to_ptr.vmem [resolvable:$true] %s40_s26 }
  0x1c   :  { %s1580_s27 = scalar_lea.vmem %s41_s26, 4096  ;;  %p1585_p11 = scmp.lt.s32.totalorder %s41_s26, %s41_s26 }
  0x1d   :  { %p1581_p10 = scmp.ne.s32.totalorder %s41_s26, %s1580_s27  ;;  %p1586_p12 = scmp.lt.s32.totalorder %s1580_s27, %s1580_s27 }
  0x1f   :  { %p1587_p13 = por %p1586_p12, %p1585_p11 }
  0x21   :  { %p1588_p0 = pnand %p1587_p13, %p1581_p10 }
  0x23   :  { %1591 = shalt.err (!%p1588_p0)
}
  0x24   :  { %46 = dma.hbm_to_vmem [thread:$0]  %s1753_s2, 4096, %s41_s26, [#allocation7], %s1622_s22, %s1622_s22, %s1623_s23  }
  0x25   :  { %1612 = dma.done.wait [#allocation4], 256  }
  0x26   :  { %1613 = vsyncadd [#allocation4], 4294967040 }
  0x27   :  { %1614 = dma.done.wait [#allocation7], 12288  }
  0x28   :  { %1615 = vsyncadd [#allocation7], 4294955008  ;;  %v1625_v0 = vmov 0   ;;  %v83_v1 = vld [vmem:[#allocation6 + $0x1c0] sm:$0xff]  ;;  %v244_v13 = vld [vmem:[#allocation6 + $0x1d0] sm:$0xff]  ;;  %s1626_s0 = smov [#allocation9]  }
  0x29   :  { %209 = vmatprep.mubr.bf16.mxu0 %v1625_v0  ;;  %358 = vmatprep.mubr.bf16.mxu1 %v1625_v0  ;;  %v84_v2 = vld [vmem:[#allocation6 + $0x1e0] sm:$0xff]  ;;  %v245_v14 = vld [vmem:[#allocation6 + $0x1f0] sm:$0xff]  ;;  %s1223_s2 = sshll.u32 %s1626_s0, 4  ;;  %s1224_s2 = int_to_ptr.vmem [resolvable:$true] %s1223_s2 }
  0x2a   :  { %v81_v3 = vld [vmem:[#allocation6 + $0x180] sm:$0xff]  ;;  %v1253_v4 = vcombine.high %v83_v1, %v84_v2  ;;  %v1252_v5 = vcombine.low %v83_v1, %v84_v2  ;;  %v1269_v16 = vcombine.high %v244_v13, %v245_v14  ;;  %v1268_v17 = vcombine.low %v244_v13, %v245_v14  ;;  %v242_v18 = vld [vmem:[#allocation6 + $0x190] sm:$0xff]  ;;  %v650_v1 = vld [vmem:[#allocation6 + $0x1c8] sm:$0xff]  ;;  %s1592_s30 = scalar_lea.vmem %s1224_s2, 256  ;;  %p1597_p2 = scmp.lt.s32.totalorder %s1224_s2, %s1224_s2 }
  0x2b   :  { %v82_v6 = vld [vmem:[#allocation6 + $0x1a0] sm:$0xff]  ;;  %v243_v19 = vld [vmem:[#allocation6 + $0x1b0] sm:$0xff]  ;;  %v651_v2 = vld [vmem:[#allocation6 + $0x1e8] sm:$0xff]  ;;  %p1593_p1 = scmp.ne.s32.totalorder %s1224_s2, %s1592_s30  ;;  %p1598_p3 = scmp.lt.s32.totalorder %s1592_s30, %s1592_s30 }
  0x2c   :  { %v1251_v7 = vcombine.high %v81_v3, %v82_v6  ;;  %v79_v8 = vld [vmem:[#allocation6 + $0x140] sm:$0xff]  ;;  %177 = vmatprep.subr.bf16.mxu0 %v1253_v4  ;;  %v1250_v10 = vcombine.low %v81_v3, %v82_v6  ;;  %v240_v20 = vld [vmem:[#allocation6 + $0x150] sm:$0xff]  ;;  %326 = vmatprep.subr.bf16.mxu1 %v1269_v16  ;;  %v1267_v22 = vcombine.high %v242_v18, %v243_v19  ;;  %v649_v6 = vld [vmem:[#allocation6 + $0x1a8] sm:$0xff] }
  0x2d   :  { %v80_v9 = vld [vmem:[#allocation6 + $0x160] sm:$0xff]  ;;  %178 = vmatpush1.bf16.msra.mxu0 %v1252_v5  ;;  %v241_v23 = vld [vmem:[#allocation6 + $0x170] sm:$0xff]  ;;  %327 = vmatpush1.bf16.msra.mxu1 %v1268_v17  ;;  %v1266_v25 = vcombine.low %v242_v18, %v243_v19  ;;  %v648_v5 = vld [vmem:[#allocation6 + $0x188] sm:$0xff]  ;;  %p1599_p4 = por %p1598_p3, %p1597_p2 }
  0x2e   :  { %179 = vmatprep.subr.bf16.mxu0 %v1251_v7  ;;  %v1249_v11 = vcombine.high %v79_v8, %v80_v9  ;;  %v77_v12 = vld [vmem:[#allocation6 + $0x100] sm:$0xff]  ;;  %v1248_v21 = vcombine.low %v79_v8, %v80_v9  ;;  %328 = vmatprep.subr.bf16.mxu1 %v1267_v22  ;;  %v1265_v28 = vcombine.high %v240_v20, %v241_v23  ;;  %v238_v29 = vld [vmem:[#allocation6 + $0x110] sm:$0xff]  ;;  %v645_v16 = vld [vmem:[#allocation6 + $0x128] sm:$0xff] }
  0x2f   :  { %v78_v15 = vld [vmem:[#allocation6 + $0x120] sm:$0xff]  ;;  %v239_v30 = vld [vmem:[#allocation6 + $0x130] sm:$0xff]  ;;  %v1264_v33 = vcombine.low %v240_v20, %v241_v23  ;;  %v1309_v7 = vcombine.high %v650_v1, %v651_v2  ;;  %v1308_v8 = vcombine.low %v650_v1, %v651_v2  ;;  %v1307_v9 = vcombine.high %v648_v5, %v649_v6  ;;  %v642_v19 = vld [vmem:[#allocation6 + $0xc8] sm:$0xff]  ;;  %p1600_p5 = pnand %p1599_p4, %p1593_p1 }
  0x30   :  { %v1247_v24 = vcombine.high %v77_v12, %v78_v15  ;;  %v75_v26 = vld [vmem:[#allocation6 + $0xc0] sm:$0xff]  ;;  %v1246_v31 = vcombine.low %v77_v12, %v78_v15  ;;  %v1263_v36 = vcombine.high %v238_v29, %v239_v30  ;;  %v236_v37 = vld [vmem:[#allocation6 + $0xd0] sm:$0xff]  ;;  %v1262_v43 = vcombine.low %v238_v29, %v239_v30  ;;  %v647_v12 = vld [vmem:[#allocation6 + $0x168] sm:$0xff] }
  0x31   :  { %180 = vmatpush1.bf16.msra.mxu0 %v1250_v10  ;;  %v76_v27 = vld [vmem:[#allocation6 + $0xe0] sm:$0xff]  ;;  %329 = vmatpush1.bf16.msra.mxu1 %v1266_v25  ;;  %v237_v38 = vld [vmem:[#allocation6 + $0xf0] sm:$0xff]  ;;  %v1668_v10 = vld [vmem:[#allocation3 + $0x8] sm:$0xff]   ;;  %v1306_v13 = vcombine.low %v648_v5, %v649_v6 }
  0x32   :  { %181 = vmatprep.subr.bf16.mxu0 %v1249_v11  ;;  %v1245_v32 = vcombine.high %v75_v26, %v76_v27  ;;  %v73_v34 = vld [vmem:[#allocation6 + $0x80] sm:$0xff]  ;;  %330 = vmatprep.subr.bf16.mxu1 %v1265_v28  ;;  %v1244_v39 = vcombine.low %v75_v26, %v76_v27  ;;  %v234_v44 = vld [vmem:[#allocation6 + $0x90] sm:$0xff]  ;;  %v1261_v46 = vcombine.high %v236_v37, %v237_v38  ;;  %v646_v11 = vld [vmem:[#allocation6 + $0x148] sm:$0xff] }
  0x33   :  { %v74_v35 = vld [vmem:[#allocation6 + $0xa0] sm:$0xff]  ;;  %v235_v45 = vld [vmem:[#allocation6 + $0xb0] sm:$0xff]  ;;  %v1260_v51 = vcombine.low %v236_v37, %v237_v38  ;;  %v1305_v14 = vcombine.high %v646_v11, %v647_v12  ;;  %v644_v15 = vld [vmem:[#allocation6 + $0x108] sm:$0xff]  ;;  %v1304_v17 = vcombine.low %v646_v11, %v647_v12 }
  0x34   :  { %v71_v40 = vld [vmem:[#allocation6 + $0x40] sm:$0xff]  ;;  %v1243_v42 = vcombine.high %v73_v34, %v74_v35  ;;  %v1242_v47 = vcombine.low %v73_v34, %v74_v35  ;;  %v232_v52 = vld [vmem:[#allocation6 + $0x50] sm:$0xff]  ;;  %v1259_v54 = vcombine.high %v234_v44, %v235_v45  ;;  %v1258_v57 = vcombine.low %v234_v44, %v235_v45  ;;  %v643_v20 = vld [vmem:[#allocation6 + $0xe8] sm:$0xff] }
  0x35   :  { %182 = vmatpush1.bf16.msra.mxu0 %v1248_v21  ;;  %v72_v41 = vld [vmem:[#allocation6 + $0x60] sm:$0xff]  ;;  %331 = vmatpush1.bf16.msra.mxu1 %v1264_v33  ;;  %v233_v53 = vld [vmem:[#allocation6 + $0x70] sm:$0xff]  ;;  %v1303_v18 = vcombine.high %v644_v15, %v645_v16  ;;  %v1302_v21 = vcombine.low %v644_v15, %v645_v16  ;;  %v1301_v22 = vcombine.high %v642_v19, %v643_v20  ;;  %v640_v23 = vld [vmem:[#allocation6 + $0x88] sm:$0xff] }
  0x36   :  { %183 = vmatprep.subr.bf16.mxu0 %v1247_v24  ;;  %332 = vmatprep.subr.bf16.mxu1 %v1263_v36  ;;  %v69_v48 = vld [vmem:[#allocation6] sm:$0xff]  ;;  %v1241_v50 = vcombine.high %v71_v40, %v72_v41  ;;  %v1240_v55 = vcombine.low %v71_v40, %v72_v41  ;;  %v230_v58 = vld [vmem:[#allocation6 + $0x10] sm:$0xff]  ;;  %v1257_v60 = vcombine.high %v232_v52, %v233_v53  ;;  %v641_v24 = vld [vmem:[#allocation6 + $0xa8] sm:$0xff] }
  0x37   :  { %v70_v49 = vld [vmem:[#allocation6 + $0x20] sm:$0xff]  ;;  %v231_v59 = vld [vmem:[#allocation6 + $0x30] sm:$0xff]  ;;  %v1256_v63 = vcombine.low %v232_v52, %v233_v53  ;;  %v1300_v25 = vcombine.low %v642_v19, %v643_v20  ;;  %v1299_v26 = vcombine.high %v640_v23, %v641_v24  ;;  %v638_v27 = vld [vmem:[#allocation6 + $0x48] sm:$0xff]  ;;  %v1298_v29 = vcombine.low %v640_v23, %v641_v24 }
  0x38   :  { %v1239_v56 = vcombine.high %v69_v48, %v70_v49  ;;  %v1238_v61 = vcombine.low %v69_v48, %v70_v49  ;;  %v1664_v62 = vld [vmem:[#allocation3] sm:$0xff]   ;;  %v1255_v3 = vcombine.high %v230_v58, %v231_v59  ;;  %v1254_v4 = vcombine.low %v230_v58, %v231_v59  ;;  %v639_v28 = vld [vmem:[#allocation6 + $0x68] sm:$0xff]  ;;  %v1436_v36 = vld [vmem:[#allocation8 + $0x78] sm:$0xff]  }
  0x39   :  { %184 = vmatpush1.bf16.msra.mxu0 %v1246_v31  ;;  %333 = vmatpush1.bf16.msra.mxu1 %v1262_v43  ;;  %v1297_v30 = vcombine.high %v638_v27, %v639_v28  ;;  %v1296_v31 = vcombine.low %v638_v27, %v639_v28  ;;  %v637_v33 = vld [vmem:[#allocation6 + $0x28] sm:$0xff]  ;;  %v1437_v37 = vld [vmem:[#allocation8 + $0x38] sm:$0xff]   ;;  %v1438_v38 = vld [vmem:[#allocation8 + $0x70] sm:$0xff]  }
  0x3a   :  { %185 = vmatprep.subr.bf16.mxu0 %v1245_v32  ;;  %334 = vmatprep.subr.bf16.mxu1 %v1261_v46  ;;  %v636_v32 = vld [vmem:[#allocation6 + $0x8] sm:$0xff]  ;;  %v1443_v43 = vld [vmem:[#allocation8 + $0x20] sm:$0xff]   ;;  %v1444_v44 = vld [vmem:[#allocation8 + $0x58] sm:$0xff]  }
  0x3b   :  { %v1295_v34 = vcombine.high %v636_v32, %v637_v33  ;;  %v1294_v35 = vcombine.low %v636_v32, %v637_v33  ;;  %v1440_v40 = vld [vmem:[#allocation8 + $0x68] sm:$0xff]   ;;  %v1445_v45 = vld [vmem:[#allocation8 + $0x18] sm:$0xff]   ;;  %v1446_v46 = vld [vmem:[#allocation8 + $0x50] sm:$0xff]  }
  0x3c   :  { %v1441_v41 = vld [vmem:[#allocation8 + $0x28] sm:$0xff]   ;;  %v1678_v52 = vld [vmem:[#allocation6 + $0x1d8] sm:$0xff] }
  0x3d   :  { %186 = vmatpush1.bf16.msra.mxu0 %v1244_v39  ;;  %335 = vmatpush1.bf16.msra.mxu1 %v1260_v51  ;;  %v1439_v39 = vld [vmem:[#allocation8 + $0x30] sm:$0xff]   ;;  %v1448_v48 = vld [vmem:[#allocation8 + $0x48] sm:$0xff]   ;;  %v1451_v51 = vld [vmem:[#allocation8] sm:$0xff]  }
  0x3e   :  { %187 = vmatprep.subr.bf16.mxu0 %v1243_v42  ;;  %336 = vmatprep.subr.bf16.mxu1 %v1259_v54  ;;  %v1442_v42 = vld [vmem:[#allocation8 + $0x60] sm:$0xff]   ;;  %v1449_v49 = vld [vmem:[#allocation8 + $0x8] sm:$0xff]   ;;  %v1680_v53 = vld [vmem:[#allocation6 + $0x1f8] sm:$0xff] }
  0x3f   :  { %v1325_v54 = vcombine.high %v1678_v52, %v1680_v53 }
  0x41   :  { %188 = vmatpush1.bf16.msra.mxu0 %v1242_v47  ;;  %337 = vmatpush1.bf16.msra.mxu1 %v1258_v57  ;;  %v1447_v47 = vld [vmem:[#allocation8 + $0x10] sm:$0xff]  }
  0x42   :  { %189 = vmatprep.subr.bf16.mxu0 %v1241_v50  ;;  %338 = vmatprep.subr.bf16.mxu1 %v1257_v60  ;;  %v1450_v50 = vld [vmem:[#allocation8 + $0x40] sm:$0xff]  }
  0x45   :  { %190 = vmatpush1.bf16.msra.mxu0 %v1240_v55  ;;  %339 = vmatpush1.bf16.msra.mxu1 %v1256_v63  ;;  %v1324_v55 = vcombine.low %v1678_v52, %v1680_v53 }
  0x46   :  { %191 = vmatprep.subr.bf16.mxu0 %v1239_v56  ;;  %340 = vmatprep.subr.bf16.mxu1 %v1255_v3 }
  0x49   :  { %192 = vmatpush1.bf16.msra.mxu0 %v1238_v61  ;;  %341 = vmatpush1.bf16.msra.mxu1 %v1254_v4 }
  0x4a   :  { %732 = vmatprep.subr.bf16.mxu1 %v1309_v7  ;;  %1369 = vmatprep.subr.bf16.mxu0 %v1436_v36 }
  0x4c   :  { %210 = vmatmul.mubr.bf16.vlgmr.msra.gmra.mxu0 %v1664_v62  ;;  %359 = vmatmul.mubr.bf16.vlgmr.msra.gmra.mxu1 %v1664_v62 }
  0x4d   :  { %219 = vmatprep.mubr.bf16.mxu0 %v1625_v0  ;;  %368 = vmatprep.mubr.bf16.mxu1 %v1625_v0 }
  0x4e   :  { %733 = vmatpush1.bf16.msra.mxu1 %v1308_v8  ;;  %1370 = vmatpush3.bf16.msra.mxu0 %v1437_v37 }
  0x4f   :  { %734 = vmatprep.subr.bf16.mxu1 %v1307_v9  ;;  %1371 = vmatprep.subr.bf16.mxu0 %v1438_v38 }
  0x52   :  { %735 = vmatpush1.bf16.msra.mxu1 %v1306_v13  ;;  %1372 = vmatpush3.bf16.msra.mxu0 %v1439_v39 }
  0x53   :  { %736 = vmatprep.subr.bf16.mxu1 %v1305_v14  ;;  %1373 = vmatprep.subr.bf16.mxu0 %v1440_v40 }
  0x54   :  { %220 = vmatmul.mubr.bf16.gmra.mxu0 %v1668_v10  ;;  %369 = vmatmul.mubr.bf16.gmra.mxu1 %v1668_v10 }
  0x55   :  { %764 = vmatprep.mubr.bf16.mxu1 %v1625_v0 }
  0x56   :  { %737 = vmatpush1.bf16.msra.mxu1 %v1304_v17  ;;  %1374 = vmatpush3.bf16.msra.mxu0 %v1441_v41 }
  0x57   :  { %738 = vmatprep.subr.bf16.mxu1 %v1303_v18  ;;  %1375 = vmatprep.subr.bf16.mxu0 %v1442_v42 }
  0x5a   :  { %739 = vmatpush1.bf16.msra.mxu1 %v1302_v21  ;;  %1376 = vmatpush3.bf16.msra.mxu0 %v1443_v43 }
  0x5b   :  { %740 = vmatprep.subr.bf16.mxu1 %v1301_v22  ;;  %1377 = vmatprep.subr.bf16.mxu0 %v1444_v44  ;;  %v797_v44 = vld [vmem:[#allocation6 + $0x198] sm:$0xff] }
  0x5e   :  { %741 = vmatpush1.bf16.msra.mxu1 %v1300_v25  ;;  %1378 = vmatpush3.bf16.msra.mxu0 %v1445_v45  ;;  %v798_v45 = vld [vmem:[#allocation6 + $0x1b8] sm:$0xff] }
  0x5f   :  { %742 = vmatprep.subr.bf16.mxu1 %v1299_v26  ;;  %1379 = vmatprep.subr.bf16.mxu0 %v1446_v46 }
  0x62   :  { %743 = vmatpush1.bf16.msra.mxu1 %v1298_v29  ;;  %1380 = vmatpush3.bf16.msra.mxu0 %v1447_v47 }
  0x63   :  { %744 = vmatprep.subr.bf16.mxu1 %v1297_v30  ;;  %1381 = vmatprep.subr.bf16.mxu0 %v1448_v48 }
  0x66   :  { %745 = vmatpush1.bf16.msra.mxu1 %v1296_v31  ;;  %1382 = vmatpush3.bf16.msra.mxu0 %v1449_v49 }
  0x67   :  { %746 = vmatprep.subr.bf16.mxu1 %v1295_v34  ;;  %1383 = vmatprep.subr.bf16.mxu0 %v1450_v50 }
  0x6a   :  { %747 = vmatpush1.bf16.msra.mxu1 %v1294_v35  ;;  %1384 = vmatpush3.bf16.msra.mxu0 %v1451_v51 }
  0x6b   :  { %881 = vmatprep.subr.bf16.mxu0 %v1325_v54 }
  0x6d   :  { %765 = vmatmul.mubr.bf16.vlgmr.msra.gmra.mxu1 %v1664_v62 }
  0x6e   :  { %774 = vmatprep.mubr.bf16.mxu1 %v1625_v0 }
  0x75   :  { %775 = vmatmul.mubr.bf16.gmra.mxu1 %v1668_v10 }
 0x10c   :  { %v211_v56 = vpop.f32.mrf.mxu0  ;;  %v360_v16 = vpop.f32.mrf.mxu1 }
 0x10d   :  { %v1270_v57 = vmul.f32 -1.442695, %v211_v56 }
 0x10e   :  { %v213_v58 = vpop.f32.mrf.mxu0  ;;  %v362_v21 = vpop.f32.mrf.mxu1 }
 0x10f   :  { %1468 = vpow2.f32 %v1270_v57  ;;  %v1271_v59 = vmul.f32 -1.442695, %v213_v58  ;;  %v1323_v57 = vcombine.high %v797_v44, %v798_v45 }
 0x110   :  { %v215_v60 = vpop.f32.mrf.mxu0  ;;  %v364_v26 = vpop.f32.mrf.mxu1 }
 0x111   :  { %1470 = vpow2.f32 %v1271_v59  ;;  %v1272_v61 = vmul.f32 -1.442695, %v215_v60 }
 0x112   :  { %v217_v63 = vpop.f32.mrf.mxu0  ;;  %v366_v30 = vpop.f32.mrf.mxu1 }
 0x113   :  { %1472 = vpow2.f32 %v1272_v61  ;;  %v1273_v1 = vmul.f32 -1.442695, %v217_v63 }
 0x114   :  { %v1686_v2 = vpop.f32.mrf.mxu0  ;;  %v370_v32 = vpop.f32.mrf.mxu1 }
 0x115   :  { %1474 = vpow2.f32 %v1273_v1  ;;  %v1274_v3 = vmul.f32 -1.442695, %v1686_v2 }
 0x116   :  { %v223_v4 = vpop.f32.mrf.mxu0  ;;  %v372_v39 = vpop.f32.mrf.mxu1 }
 0x117   :  { %1476 = vpow2.f32 %v1274_v3  ;;  %v1275_v5 = vmul.f32 -1.442695, %v223_v4 }
 0x118   :  { %v225_v6 = vpop.f32.mrf.mxu0  ;;  %v374_v48 = vpop.f32.mrf.mxu1 }
 0x119   :  { %1478 = vpow2.f32 %v1275_v5  ;;  %v1276_v7 = vmul.f32 -1.442695, %v225_v6  ;;  %v1322_v5 = vcombine.low %v797_v44, %v798_v45 }
 0x11a   :  { %v1689_v8 = vpop.f32.mrf.mxu0  ;;  %v376_v1 = vpop.f32.mrf.mxu1 }
 0x11b   :  { %1480 = vpow2.f32 %v1276_v7  ;;  %v1277_v9 = vmul.f32 -1.442695, %v1689_v8 }
 0x11c   :  { %v1469_v11 = vpop.eup %1468 }
 0x11d   :  { %1482 = vpow2.f32 %v1277_v9  ;;  %v403_v13 = vadd.f32 1.0, %v1469_v11  ;;  %v793_v11 = vld [vmem:[#allocation6 + $0x118] sm:$0xff] }
 0x11e   :  { %v1471_v12 = vpop.eup %1470 }
 0x11f   :  { %v404_v14 = vadd.f32 1.0, %v1471_v12  ;;  %v794_v12 = vld [vmem:[#allocation6 + $0x138] sm:$0xff] }
 0x120   :  { %v1473_v15 = vpop.eup %1472  ;;  %v1318_v52 = vcombine.low %v793_v11, %v794_v12 }
 0x121   :  { %1484 = vrcp.f32 %v404_v14  ;;  %v405_v17 = vadd.f32 1.0, %v1473_v15 }
 0x122   :  { %v1475_v18 = vpop.eup %1474  ;;  %1486 = vrcp.f32 %v403_v13 }
 0x123   :  { %1488 = vrcp.f32 %v405_v17  ;;  %v406_v19 = vadd.f32 1.0, %v1475_v18  ;;  %v792_v17 = vld [vmem:[#allocation6 + $0xf8] sm:$0xff] }
 0x124   :  { %v1477_v20 = vpop.eup %1476  ;;  %v790_v18 = vld [vmem:[#allocation6 + $0xb8] sm:$0xff] }
 0x125   :  { %1490 = vrcp.f32 %v406_v19  ;;  %v407_v23 = vadd.f32 1.0, %v1477_v20 }
 0x126   :  { %v1479_v22 = vpop.eup %1478 }
 0x127   :  { %v408_v24 = vadd.f32 1.0, %v1479_v22  ;;  %v788_v22 = vld [vmem:[#allocation6 + $0x78] sm:$0xff] }
 0x128   :  { %v1481_v25 = vpop.eup %1480 }
 0x129   :  { %1492 = vrcp.f32 %v408_v24  ;;  %v409_v27 = vadd.f32 1.0, %v1481_v25  ;;  %v785_v25 = vld [vmem:[#allocation6 + $0x18] sm:$0xff] }
 0x12a   :  { %v1483_v28 = vpop.eup %1482  ;;  %1494 = vrcp.f32 %v407_v23 }
 0x12b   :  { %1496 = vrcp.f32 %v409_v27  ;;  %v410_v29 = vadd.f32 1.0, %v1483_v28 }
 0x12d   :  { %1498 = vrcp.f32 %v410_v29 }
 0x12e   :  { %v1485_v31 = vpop.eup %1484 }
 0x12f   :  { %v1487_v33 = vpop.eup %1486  ;;  %v428_v35 = vmul.f32 %v1485_v31, %v213_v58  ;;  %v1453_v31 = vld [vmem:[#allocation8 + $0xb8] sm:$0xff]  }
 0x130   :  { %v1489_v34 = vpop.eup %1488  ;;  %v427_v38 = vmul.f32 %v1487_v33, %v211_v56  ;;  %v796_v56 = vld [vmem:[#allocation6 + $0x178] sm:$0xff]  ;;  %v1455_v33 = vld [vmem:[#allocation8 + $0xb0] sm:$0xff]  }
 0x131   :  { %v429_v36 = vmul.f32 %v1489_v34, %v215_v60  ;;  %v436_v42 = vmul.f32 %v428_v35, %v362_v21  ;;  %v795_v60 = vld [vmem:[#allocation6 + $0x158] sm:$0xff]  ;;  %v1456_v34 = vld [vmem:[#allocation8 + $0xe8] sm:$0xff]  }
 0x132   :  { %v1491_v37 = vpop.eup %1490  ;;  %v435_v47 = vmul.f32 %v427_v38, %v360_v16  ;;  %v1321_v9 = vcombine.high %v795_v60, %v796_v56  ;;  %v1319_v16 = vcombine.high %v793_v11, %v794_v12  ;;  %v787_v21 = vld [vmem:[#allocation6 + $0x58] sm:$0xff]  ;;  %v1457_v35 = vld [vmem:[#allocation8 + $0xa8] sm:$0xff]   ;;  %v1463_v38 = vld [vmem:[#allocation8 + $0x90] sm:$0xff]  }
 0x133   :  { %v430_v40 = vmul.f32 %v1491_v37, %v217_v63  ;;  %v437_v41 = vmul.f32 %v429_v36, %v364_v26  ;;  %v1313_v24 = vcombine.high %v787_v21, %v788_v22  ;;  %v786_v26 = vld [vmem:[#allocation6 + $0x38] sm:$0xff]  ;;  %v1312_v27 = vcombine.low %v787_v21, %v788_v22  ;;  %v1458_v36 = vld [vmem:[#allocation8 + $0xe0] sm:$0xff]  }
 0x134   :  { %v1311_v28 = vcombine.high %v785_v25, %v786_v26  ;;  %v1310_v29 = vcombine.low %v785_v25, %v786_v26  ;;  %v1459_v37 = vld [vmem:[#allocation8 + $0xa0] sm:$0xff]  }
 0x135   :  { %v438_v43 = vmul.f32 %v430_v40, %v366_v30  ;;  %v447_v54 = vpack.c.bf16 %v437_v41, %v435_v47  ;;  %v1452_v30 = vld [vmem:[#allocation8 + $0xf8] sm:$0xff]   ;;  %v1465_v40 = vld [vmem:[#allocation8 + $0x88] sm:$0xff]   ;;  %v1466_v41 = vld [vmem:[#allocation8 + $0xc0] sm:$0xff]  }
 0x136   :  { %v1493_v46 = vpop.eup %1492  ;;  %1397 = vmatprep.subr.bf16.mxu1 %v1452_v30 }
 0x137   :  { %v1495_v49 = vpop.eup %1494  ;;  %v448_v50 = vpack.c.bf16 %v438_v43, %v436_v42  ;;  %v432_v59 = vmul.f32 %v1493_v46, %v223_v4  ;;  %1398 = vmatpush3.bf16.msra.mxu1 %v1453_v31  ;;  %v1467_v42 = vld [vmem:[#allocation8 + $0x80] sm:$0xff]   ;;  %v1701_v43 = vpop.f32.mrf.mxu1 }
 0x138   :  { %v1497_v51 = vpop.eup %1496  ;;  %v431_v63 = vmul.f32 %v1495_v49, %v1686_v2  ;;  %v1320_v2 = vcombine.low %v795_v60, %v796_v56 }
 0x139   :  { %v433_v58 = vmul.f32 %v1497_v51, %v225_v6  ;;  %611 = vmatprep.mubr.bf16.mxu0 %v448_v50  ;;  %v440_v4 = vmul.f32 %v432_v59, %v372_v39  ;;  %v1464_v39 = vld [vmem:[#allocation8 + $0xc8] sm:$0xff]   ;;  %v1703_v44 = vpop.f32.mrf.mxu1 }
 0x13a   :  { %v1499_v61 = vpop.eup %1498  ;;  %612 = vmatmul.mubr.bf16.vlgmr.msra.gmra.mxu0 %v447_v54  ;;  %v439_v13 = vmul.f32 %v431_v63, %v370_v32  ;;  %v1454_v32 = vld [vmem:[#allocation8 + $0xf0] sm:$0xff]   ;;  %v1327_v49 = vmul.f32 -1.442695, %v1703_v44  ;;  %v1326_v54 = vmul.f32 -1.442695, %v1701_v43 }
 0x13b   :  { %v434_v3 = vmul.f32 %v1499_v61, %v1689_v8  ;;  %882 = vmatpush1.bf16.msra.mxu0 %v1324_v55  ;;  %v441_v7 = vmul.f32 %v433_v58, %v374_v48  ;;  %v791_v8 = vld [vmem:[#allocation6 + $0xd8] sm:$0xff]  ;;  %1399 = vmatprep.subr.bf16.mxu1 %v1454_v32  ;;  %v1705_v45 = vpop.f32.mrf.mxu1 }
 0x13c   :  { %883 = vmatprep.subr.bf16.mxu0 %v1323_v57  ;;  %v1317_v53 = vcombine.high %v791_v8, %v792_v17  ;;  %v789_v55 = vld [vmem:[#allocation6 + $0x98] sm:$0xff]  ;;  %v1316_v19 = vcombine.low %v791_v8, %v792_v17  ;;  %1400 = vmatpush3.bf16.msra.mxu1 %v1455_v33  ;;  %v1328_v50 = vmul.f32 -1.442695, %v1705_v45  ;;  %1500 = vpow2.f32 %v1327_v49 }
 0x13d   :  { %v442_v6 = vmul.f32 %v434_v3, %v376_v1  ;;  %v449_v15 = vpack.c.bf16 %v441_v7, %v439_v13  ;;  %v1315_v20 = vcombine.high %v789_v55, %v790_v18  ;;  %v1314_v23 = vcombine.low %v789_v55, %v790_v18  ;;  %1401 = vmatprep.subr.bf16.mxu1 %v1456_v34  ;;  %v1707_v46 = vpop.f32.mrf.mxu1 }
 0x13e   :  { %v1329_v51 = vmul.f32 -1.442695, %v1707_v46  ;;  %1502 = vpow2.f32 %v1328_v50 }
 0x13f   :  { %v450_v14 = vpack.c.bf16 %v442_v6, %v440_v4  ;;  %884 = vmatpush1.bf16.msra.mxu0 %v1322_v5  ;;  %v1709_v47 = vpop.f32.mrf.mxu1 }
 0x140   :  { %885 = vmatprep.subr.bf16.mxu0 %v1321_v9  ;;  %1402 = vmatpush3.bf16.msra.mxu1 %v1457_v35  ;;  %1504 = vpow2.f32 %v1329_v51  ;;  %v1330_v5 = vmul.f32 -1.442695, %v1709_v47 }
 0x141   :  { %619 = vmatprep.mubr.bf16.mxu0 %v450_v14  ;;  %1403 = vmatprep.subr.bf16.mxu1 %v1458_v36  ;;  %v1711_v48 = vpop.f32.mrf.mxu1  ;;  %1506 = vpow2.f32 %v1326_v54 }
 0x142   :  { %620 = vmatmul.mubr.bf16.gmra.mxu0 %v449_v15  ;;  %v1331_v56 = vmul.f32 -1.442695, %v1711_v48 }
 0x143   :  { %886 = vmatpush1.bf16.msra.mxu0 %v1320_v2  ;;  %913 = vmatprep.mubr.bf16.mxu0 %v1625_v0  ;;  %v1717_v57 = vpop.f32.mrf.mxu1 }
 0x144   :  { %887 = vmatprep.subr.bf16.mxu0 %v1319_v16  ;;  %1404 = vmatpush3.bf16.msra.mxu1 %v1459_v37  ;;  %v1332_v63 = vmul.f32 -1.442695, %v1717_v57  ;;  %1508 = vpow2.f32 %v1331_v56 }
 0x145   :  { %v1719_v58 = vpop.f32.mrf.mxu1 }
 0x146   :  { %v1333_v3 = vmul.f32 -1.442695, %v1719_v58  ;;  %1510 = vpow2.f32 %v1332_v63 }
 0x147   :  { %888 = vmatpush1.bf16.msra.mxu0 %v1318_v52 }
 0x148   :  { %889 = vmatprep.subr.bf16.mxu0 %v1317_v53  ;;  %1512 = vpow2.f32 %v1333_v3 }
 0x149   :  { %1514 = vpow2.f32 %v1330_v5  ;;  %v1501_v12 = vpop.eup %1500 }
 0x14a   :  { %v959_v8 = vadd.f32 1.0, %v1501_v12 }
 0x14b   :  { %890 = vmatpush1.bf16.msra.mxu0 %v1316_v19  ;;  %v1503_v14 = vpop.eup %1502 }
 0x14c   :  { %891 = vmatprep.subr.bf16.mxu0 %v1315_v20  ;;  %v960_v52 = vadd.f32 1.0, %v1503_v14  ;;  %1516 = vrcp.f32 %v959_v8 }
 0x14d   :  { %v1505_v2 = vpop.eup %1504 }
 0x14e   :  { %v1507_v16 = vpop.eup %1506  ;;  %v961_v53 = vadd.f32 1.0, %v1505_v2  ;;  %1518 = vrcp.f32 %v960_v52 }
 0x14f   :  { %892 = vmatpush1.bf16.msra.mxu0 %v1314_v23  ;;  %v958_v55 = vadd.f32 1.0, %v1507_v16 }
 0x150   :  { %893 = vmatprep.subr.bf16.mxu0 %v1313_v24  ;;  %1520 = vrcp.f32 %v961_v53 }
 0x151   :  { %v1509_v18 = vpop.eup %1508  ;;  %1522 = vrcp.f32 %v958_v55 }
 0x152   :  { %v963_v22 = vadd.f32 1.0, %v1509_v18 }
 0x153   :  { %894 = vmatpush1.bf16.msra.mxu0 %v1312_v27  ;;  %v1511_v19 = vpop.eup %1510 }
 0x154   :  { %895 = vmatprep.subr.bf16.mxu0 %v1311_v28  ;;  %v964_v23 = vadd.f32 1.0, %v1511_v19  ;;  %1524 = vrcp.f32 %v963_v22 }
 0x155   :  { %v1513_v20 = vpop.eup %1512 }
 0x156   :  { %v1515_v21 = vpop.eup %1514  ;;  %v965_v24 = vadd.f32 1.0, %v1513_v20  ;;  %1526 = vrcp.f32 %v964_v23 }
 0x157   :  { %896 = vmatpush1.bf16.msra.mxu0 %v1310_v29  ;;  %v962_v25 = vadd.f32 1.0, %v1515_v21 }
 0x158   :  { %1528 = vrcp.f32 %v965_v24 }
 0x159   :  { %1530 = vrcp.f32 %v962_v25  ;;  %v1517_v26 = vpop.eup %1516 }
 0x15a   :  { %914 = vmatmul.mubr.bf16.vlgmr.msra.gmra.mxu0 %v1664_v62  ;;  %v1460_v62 = vld [vmem:[#allocation8 + $0xd8] sm:$0xff]   ;;  %v983_v34 = vmul.f32 %v1517_v26, %v1703_v44 }
 0x15b   :  { %923 = vmatprep.mubr.bf16.mxu0 %v1625_v0  ;;  %v1461_v0 = vld [vmem:[#allocation8 + $0x98] sm:$0xff]   ;;  %1405 = vmatprep.subr.bf16.mxu1 %v1460_v62  ;;  %v1519_v28 = vpop.eup %1518 }
 0x15c   :  { %1406 = vmatpush3.bf16.msra.mxu1 %v1461_v0  ;;  %v984_v32 = vmul.f32 %v1519_v28, %v1705_v45 }
 0x15d   :  { %v1521_v29 = vpop.eup %1520 }
 0x15e   :  { %v1523_v31 = vpop.eup %1522  ;;  %v985_v35 = vmul.f32 %v1521_v29, %v1707_v46 }
 0x15f   :  { %v982_v36 = vmul.f32 %v1523_v31, %v1701_v43 }
 0x162   :  { %924 = vmatmul.mubr.bf16.gmra.mxu0 %v1668_v10  ;;  %v1462_v10 = vld [vmem:[#allocation8 + $0xd0] sm:$0xff]  }
 0x163   :  { %1407 = vmatprep.subr.bf16.mxu1 %v1462_v10 }
 0x164   :  { %1408 = vmatpush3.bf16.msra.mxu1 %v1463_v38  ;;  %v1525_v38 = vpop.eup %1524 }
 0x165   :  { %1409 = vmatprep.subr.bf16.mxu1 %v1464_v39  ;;  %v987_v43 = vmul.f32 %v1525_v38, %v1711_v48 }
 0x168   :  { %1410 = vmatpush3.bf16.msra.mxu1 %v1465_v40 }
 0x169   :  { %1411 = vmatprep.subr.bf16.mxu1 %v1466_v41  ;;  %v1527_v41 = vpop.eup %1526 }
 0x16a   :  { %v1529_v49 = vpop.eup %1528  ;;  %v988_v44 = vmul.f32 %v1527_v41, %v1717_v57 }
 0x16b   :  { %v1531_v45 = vpop.eup %1530  ;;  %v989_v46 = vmul.f32 %v1529_v49, %v1719_v58 }
 0x16c   :  { %1412 = vmatpush3.bf16.msra.mxu1 %v1467_v42 }
 0x1fa   :  { %v1385_v59 = vpop.f32.mrf.mxu0 }
 0x1fc   :  { %v1386_v60 = vpop.f32.mrf.mxu0 }
 0x1fd   :  { %v1722_v61 = vadd.f32 %v1386_v60, %v1385_v59  ;;  %v986_v59 = vmul.f32 %v1531_v45, %v1709_v47 }
 0x1fe   :  { %v1388_v1 = vpop.f32.mrf.mxu0 }
 0x200   :  { %v1389_v7 = vpop.f32.mrf.mxu0 }
 0x201   :  { %v1727_v9 = vadd.f32 %v1389_v7, %v1388_v1 }
 0x202   :  { %v1391_v4 = vpop.f32.mrf.mxu0 }
 0x204   :  { %v1392_v6 = vpop.f32.mrf.mxu0 }
 0x205   :  { %v1729_v11 = vadd.f32 %v1392_v6, %v1391_v4 }
 0x206   :  { %v1394_v13 = vpop.f32.mrf.mxu0 }
 0x208   :  { %v1395_v15 = vpop.f32.mrf.mxu0 }
 0x209   :  { %v1731_v17 = vadd.f32 %v1395_v15, %v1394_v13 }
 0x21a   :  { %v915_v27 = vpop.f32.mrf.mxu0 }
 0x21b   :  { %v990_v39 = vmul.f32 %v982_v36, %v915_v27 }
 0x21c   :  { %v917_v30 = vpop.f32.mrf.mxu0 }
 0x21d   :  { %v991_v0 = vmul.f32 %v983_v34, %v917_v30 }
 0x21e   :  { %v919_v33 = vpop.f32.mrf.mxu0 }
 0x21f   :  { %v992_v37 = vmul.f32 %v984_v32, %v919_v33 }
 0x220   :  { %v921_v62 = vpop.f32.mrf.mxu0 }
 0x221   :  { %v993_v10 = vmul.f32 %v985_v35, %v921_v62  ;;  %v1002_v50 = vpack.c.bf16 %v992_v37, %v990_v39 }
 0x222   :  { %v925_v40 = vpop.f32.mrf.mxu0 }
 0x223   :  { %v1003_v42 = vpack.c.bf16 %v993_v10, %v991_v0  ;;  %v994_v3 = vmul.f32 %v986_v59, %v925_v40 }
 0x224   :  { %v927_v51 = vpop.f32.mrf.mxu0 }
 0x225   :  { %1166 = vmatprep.mubr.bf16.mxu1 %v1003_v42  ;;  %v995_v63 = vmul.f32 %v987_v43, %v927_v51 }
 0x226   :  { %v929_v54 = vpop.f32.mrf.mxu0  ;;  %1167 = vmatmul.mubr.bf16.vlgmr.msra.gmra.mxu1 %v1002_v50 }
 0x227   :  { %v996_v60 = vmul.f32 %v988_v44, %v929_v54 }
 0x228   :  { %v931_v56 = vpop.f32.mrf.mxu0 }
 0x229   :  { %v997_v1 = vmul.f32 %v989_v46, %v931_v56  ;;  %v1004_v7 = vpack.c.bf16 %v996_v60, %v994_v3 }
 0x22b   :  { %v1005_v5 = vpack.c.bf16 %v997_v1, %v995_v63 }
 0x22d   :  { %1174 = vmatprep.mubr.bf16.mxu1 %v1005_v5 }
 0x22e   :  { %1175 = vmatmul.mubr.bf16.gmra.mxu1 %v1004_v7 }
 0x2e6   :  { %v1413_v4 = vpop.f32.mrf.mxu1 }
 0x2e8   :  { %v1414_v6 = vpop.f32.mrf.mxu1 }
 0x2e9   :  { %v1415_v12 = vadd.f32 %v1414_v6, %v1413_v4 }
 0x2ea   :  { %v1416_v57 = vpop.f32.mrf.mxu1 }
 0x2eb   :  { %v1183_v58 = vadd.f32 %v1415_v12, %v1722_v61 }
 0x2ec   :  { %v1417_v13 = vpop.f32.mrf.mxu1 }
 0x2ed   :  { %v1418_v14 = vadd.f32 %v1417_v13, %v1416_v57 }
 0x2ee   :  { %v1419_v48 = vpop.f32.mrf.mxu1 }
 0x2ef   :  { %v1184_v47 = vadd.f32 %v1418_v14, %v1727_v9 }
 0x2f0   :  { %v1420_v2 = vpop.f32.mrf.mxu1 }
 0x2f1   :  { %v1361_v15 = vpack.c.bf16 %v1184_v47, %v1183_v58  ;;  %v1421_v8 = vadd.f32 %v1420_v2, %v1419_v48 }
 0x2f2   :  { %v1422_v16 = vpop.f32.mrf.mxu1 }
 0x2f3   :  { %1362 = vst [vmem:[#allocation9] sm:$0xff] %v1361_v15   ;;  %v1185_v55 = vadd.f32 %v1421_v8, %v1729_v11 }
 0x2f4   :  { %v1423_v52 = vpop.f32.mrf.mxu1 }
 0x2f5   :  { %v1424_v53 = vadd.f32 %v1423_v52, %v1422_v16 }
 0x2f7   :  { %v1186_v18 = vadd.f32 %v1424_v53, %v1731_v17 }
 0x2f9   :  { %v1366_v19 = vpack.c.bf16 %v1186_v18, %v1185_v55 }
 0x2fb   :  { %1368 = vst [vmem:[#allocation9 + $0x8] sm:$0xff] %v1366_v19  }
 0x2fc   :  { %1603 = shalt.err (!%p1600_p5)
}
 0x2fd   :  { %1229 = dma.vmem_to_hbm [thread:$0]  %s1224_s2, 256, %s1754_s3, [#allocation5], %s1622_s22, %s1622_s22, %s1623_s23  }
 0x2fe   :  { %1616 = dma.done.wait [#allocation5], 256  }
 0x2ff   :  { %1617 = vsyncadd [#allocation5], 4294967040 }
 0x300   :  { %1233 = vsyncpa [#allocation4], 1 }
 0x301   :  { %1234 = vsyncpa [#allocation7], 1 }
 0x302   :  { %1235 = vsyncpa [#allocation5], 1 }

</bundles_post_ra>
